<compile_context>
chip_gen: v6e
topology: v6e:2x2x1
jax: 0.10.0
libtpu: 0.0.40
codegen_flags: <defaults>
</compile_context>

<pallas_src>
import functools

import jax
import jax.numpy as jnp
import numpy as np
from jax.experimental import pallas as pl
from jax.experimental.pallas import tpu as pltpu

BN_EPS = 1e-5
_KW = 5      # conv kernel width
_PAD = 3     # conv padding along W
_POOL = 5    # avg-pool width / stride


# ---------------------------------------------------------------------------
# Pallas kernels: each is [folded FMA] -> one MXU matmul -> one full-tile store
# ---------------------------------------------------------------------------
def _conv1_kernel(x_ref, band_ref, y_ref, st_ref):
    """conv1 as a single folded matmul + per-tile per-position stats.

    x_ref   : (tm, Wp*Cin)        f32, zero-padded along W, lane = w*Cin + ci
    band_ref: (Wp*Cin, W1p*Cout)  f32 banded conv weight (also emits conv2's zero pad cols)
    y_ref   : (tm, W1p*Cout)      intermediate dtype
    st_ref  : (1, 2, W1p*Cout)    f32 [sum ; sum of squares] over this tile's rows
    """
    y = jnp.dot(x_ref[...], band_ref[...], preferred_element_type=jnp.float32)
    y_ref[...] = y.astype(y_ref.dtype)
    s = jnp.sum(y, axis=0, keepdims=True)
    q = jnp.sum(y * y, axis=0, keepdims=True)
    st_ref[...] = jnp.concatenate([s, q], axis=0)[None]


def _bn1_conv2_kernel(y1_ref, band_ref, sc_ref, sh_ref, y2_ref, st_ref, *,
                      tile_m, m_valid, mask_rows):
    """bn1 (folded scale/shift, zeroed on pad lanes) + ReLU + conv2 + per-tile stats."""
    a = jnp.maximum(y1_ref[...].astype(jnp.float32) * sc_ref[...] + sh_ref[...], 0.0)
    if mask_rows:
        # rows beyond the real M are padding; keep them exactly zero so they don't
        # pollute conv2's output or its statistics.
        row = jax.lax.broadcasted_iota(jnp.int32, a.shape, 0) + pl.program_id(0) * tile_m
        a = jnp.where(row < m_valid, a, 0.0)
    y = jnp.dot(a, band_ref[...], preferred_element_type=jnp.float32)
    y2_ref[...] = y.astype(y2_ref.dtype)
    s = jnp.sum(y, axis=0, keepdims=True)
    q = jnp.sum(y * y, axis=0, keepdims=True)
    st_ref[...] = jnp.concatenate([s, q], axis=0)[None]


def _bn2_pool_kernel(y2_ref, sc_ref, sh_ref, pool_ref, o_ref):
    """bn2 (folded) + ReLU + avg_pool(1,5) via a constant pooling matrix -> one store."""
    a = jnp.maximum(y2_ref[...].astype(jnp.float32) * sc_ref[...] + sh_ref[...], 0.0)
    o_ref[...] = jnp.dot(a, pool_ref[...],
                         preferred_element_type=jnp.float32).astype(o_ref.dtype)


# ---------------------------------------------------------------------------
# Wrapper helpers (plain JAX / numpy, all trace-time-static index math)
# ---------------------------------------------------------------------------
def _pad_up(x, k):
    return -(-x // k) * k


def _band_weight(w_conv, cin, cout, w_in_pad, w_out, out_pad):
    """Fold a (Cout, Cin, 1, 5) conv weight into a banded matrix for folded rows.

    Maps a zero-padded folded input row (w_in_pad*cin lanes, lane = w*cin + ci) to a folded
    output row ((w_out + 2*out_pad)*cout lanes, lane = w*cout + co).  The out_pad columns on
    both ends are exact zeros (they become the next conv's zero padding).
    """
    w_i, t_i, ci_i, co_i = np.meshgrid(np.arange(w_out), np.arange(_KW),
                                       np.arange(cin), np.arange(cout), indexing='ij')
    rows = ((w_i + t_i) * cin + ci_i).ravel()
    cols = ((w_i + out_pad) * cout + co_i).ravel()
    vals = w_conv[co_i.ravel(), ci_i.ravel(), 0, t_i.ravel()].astype(jnp.float32)
    band = jnp.zeros((w_in_pad * cin, (w_out + 2 * out_pad) * cout), jnp.float32)
    return band.at[rows, cols].set(vals)


def _pool_matrix(w2_out, p_out, cout):
    """Constant (W2*C, P*C) avg-pool(1,5) matrix for folded rows."""
    p_i, k_i, c_i = np.meshgrid(np.arange(p_out), np.arange(_POOL), np.arange(cout),
                                indexing='ij')
    mat = np.zeros((w2_out * cout, p_out * cout), np.float32)
    mat[((_POOL * p_i + k_i) * cout + c_i).ravel(),
        (p_i * cout + c_i).ravel()] = 1.0 / _POOL
    return jnp.asarray(mat)


def _bn_affine(stats, gamma, beta, valid_rows, w_lo, w_hi, cout):
    """Per-tile (sum, sumsq) partials -> per-channel folded BN scale/shift.

    Chan-style parallel-variance merge: each (tile, width-position) group contributes a
    small-count centered moment, so the global variance never comes from a large-count
    E[y^2] - E[y]^2 subtraction.  Padded rows are exact zeros and excluded via valid_rows.
    """
    n_t, _, lanes = stats.shape
    st = stats.reshape(n_t, 2, lanes // cout, cout)[:, :, w_lo:w_hi, :]
    s, q = st[:, 0], st[:, 1]                                       # (n_t, Wv, C)
    n = jnp.asarray(np.asarray(valid_rows, np.float32))[:, None, None]
    count = float(np.sum(valid_rows) * (w_hi - w_lo))
    mean = jnp.sum(s, axis=(0, 1)) / count                          # (C,)
    mu_g = s / jnp.maximum(n, 1.0)
    m2_g = jnp.maximum(q - s * mu_g, 0.0)                           # per-group centered SS
    m2 = jnp.sum(m2_g + n * (mu_g - mean) ** 2, axis=(0, 1))        # (C,)
    var = jnp.maximum(m2 / count, 0.0)                              # biased (training BN)
    scale = gamma * jax.lax.rsqrt(var + BN_EPS)
    shift = beta - mean * scale
    return scale, shift


def _fold_scale_shift(scale, shift, w_total, w_lo, w_hi):
    """(C,) scale/shift -> (1, w_total*C) folded rows; positions outside [w_lo, w_hi)
    get scale = shift = 0 so ReLU keeps them exactly zero (they are conv2's padding)."""
    mask = np.zeros((w_total, 1), np.float32)
    mask[w_lo:w_hi] = 1.0
    mk = jnp.asarray(mask)
    c = scale.shape[0]
    return ((mk * scale[None, :]).reshape(1, w_total * c),
            (mk * shift[None, :]).reshape(1, w_total * c))


def _block_vmem_bytes(shape, dtype):
    """(8,128)-padded VMEM footprint of one block."""
    lead = int(np.prod(shape[:-2], dtype=np.int64)) if len(shape) > 2 else 1
    return lead * _pad_up(shape[-2], 8) * _pad_up(shape[-1], 128) * np.dtype(dtype).itemsize


def _vmem_budget():
    try:
        cap = int(pltpu.get_tpu_info().vmem_capacity_bytes)
    except Exception:
        cap = 64 * 1024 * 1024        # conservative default: v7x physical VMEM per TC
    return min(int(cap * 0.75), 100 * 1024 * 1024)


def _pick_tile_m(m, l_in, l1, l2, l_out, inter_dtype, budget, gran, max_tile=1024):
    """Largest tile_m (multiple of `gran`) whose padded, double-buffered footprint fits."""
    def footprint(t):
        p1 = (_block_vmem_bytes((t, l_in), jnp.float32)
              + _block_vmem_bytes((l_in, l1), jnp.float32)
              + _block_vmem_bytes((t, l1), inter_dtype)
              + _block_vmem_bytes((1, 2, l1), jnp.float32))
        p2 = (_block_vmem_bytes((t, l1), inter_dtype)
              + _block_vmem_bytes((l1, l2), jnp.float32)
              + 2 * _block_vmem_bytes((1, l1), jnp.float32)
              + _block_vmem_bytes((t, l2), inter_dtype)
              + _block_vmem_bytes((1, 2, l2), jnp.float32))
        p3 = (_block_vmem_bytes((t, l2), inter_dtype)
              + 2 * _block_vmem_bytes((1, l2), jnp.float32)
              + _block_vmem_bytes((l2, l_out), jnp.float32)
              + _block_vmem_bytes((t, l_out), jnp.float32))
        return 2 * max(p1, p2, p3)          # x2: Pallas double-buffers each block

    cap = min(max_tile, _pad_up(m, gran))
    if m > gran:
        cap = min(cap, _pad_up(-(-m // 2), gran))   # keep >= 2 grid steps (v7x: 2 TCs)
    best, t = gran, gran
    while t <= cap:
        if footprint(t) <= budget:
            best = t
        t += gran
    return best


# ---------------------------------------------------------------------------
# ConvBlock forward
# ---------------------------------------------------------------------------
@functools.partial(jax.jit,
                   static_argnames=("pool_size", "pool_type", "tile_m", "intermediate_dtype"))
def conv_block_forward(x_nchw, w1, w2, g1, b1, g2, b2,
                       pool_size=(1, 5), pool_type='avg', tile_m=None,
                       intermediate_dtype=jnp.bfloat16):
    """Pallas implementation of ConvBlock.forward (default pool_type='avg')."""
    assert pool_type == 'avg' and tuple(pool_size) == (1, 5)

    n, cin, h, w = x_nchw.shape
    cout = w1.shape[0]
    m = n * h

    wp = w + 2 * _PAD                      # conv1 input width (pre-padded)
    w1_out = w + 2 * _PAD - _KW + 1        # = W + 2
    w1p = w1_out + 2 * _PAD                # conv1 output stored pre-padded for conv2
    w2_out = w1p - _KW + 1                 # = W + 4
    p_out = w2_out // _POOL

    l_in, l1, l2, l_out = wp * cin, w1p * cout, w2_out * cout, p_out * cout

    gran = 8 if np.dtype(intermediate_dtype).itemsize >= 4 else 16
    budget = _vmem_budget()
    if tile_m is None:
        tile_m = _pick_tile_m(m, l_in, l1, l2, l_out, intermediate_dtype,
                              int(0.8 * budget), gran)
    tile_m = max(gran, _pad_up(int(tile_m), gran))
    m_pad = _pad_up(m, tile_m)
    n_t = m_pad // tile_m
    mask_rows = m_pad > m
    valid_rows = np.clip(m - np.arange(n_t) * tile_m, 0, tile_m)

    # ---- folded, lane-dense layouts (built once, outside the kernels) ----------------
    # NCHW -> rows (M_pad, Wp*Cin), lane = w*Cin + ci, zero pad on W and on padded rows.
    xr = jnp.transpose(x_nchw, (0, 2, 3, 1)).reshape(m, w, cin).astype(jnp.float32)
    xf = jnp.pad(xr, ((0, m_pad - m), (_PAD, _PAD), (0, 0))).reshape(m_pad, l_in)
    # conv weights -> small banded matrices on folded rows; avg-pool -> constant matrix.
    band1 = _band_weight(w1, cin, cout, wp, w1_out, out_pad=_PAD)     # (l_in, l1)
    band2 = _band_weight(w2, cout, cout, w1p, w2_out, out_pad=0)      # (l1,  l2)
    pool = _pool_matrix(w2_out, p_out, cout)                          # (l2, l_out)

    cparams = pltpu.CompilerParams(
        dimension_semantics=("parallel",),     # independent row tiles -> both TCs on v7x
        vmem_limit_bytes=budget,
    )

    # ---- pass 1: conv1 + per-tile stats ----------------------------------------------
    y1, st1 = pl.pallas_call(
        _conv1_kernel,
        grid=(n_t,),
        in_specs=[pl.BlockSpec((tile_m, l_in), lambda i: (i, 0)),
                  pl.BlockSpec((l_in, l1), lambda i: (0, 0))],
        out_specs=[pl.BlockSpec((tile_m, l1), lambda i: (i, 0)),
                   pl.BlockSpec((1, 2, l1), lambda i: (i, 0, 0))],
        out_shape=[jax.ShapeDtypeStruct((m_pad, l1), intermediate_dtype),
                   jax.ShapeDtypeStruct((n_t, 2, l1), jnp.float32)],
        compiler_params=cparams,
    )(xf, band1)

    scale1, shift1 = _bn_affine(st1, g1, b1, valid_rows, _PAD, _PAD + w1_out, cout)
    sc1, sh1 = _fold_scale_shift(scale1, shift1, w1p, _PAD, _PAD + w1_out)

    # ---- pass 2: bn1 + relu + conv2 + per-tile stats ----------------------------------
    y2, st2 = pl.pallas_call(
        functools.partial(_bn1_conv2_kernel, tile_m=tile_m, m_valid=m, mask_rows=mask_rows),
        grid=(n_t,),
        in_specs=[pl.BlockSpec((tile_m, l1), lambda i: (i, 0)),
                  pl.BlockSpec((l1, l2), lambda i: (0, 0)),
                  pl.BlockSpec((1, l1), lambda i: (0, 0)),
                  pl.BlockSpec((1, l1), lambda i: (0, 0))],
        out_specs=[pl.BlockSpec((tile_m, l2), lambda i: (i, 0)),
                   pl.BlockSpec((1, 2, l2), lambda i: (i, 0, 0))],
        out_shape=[jax.ShapeDtypeStruct((m_pad, l2), intermediate_dtype),
                   jax.ShapeDtypeStruct((n_t, 2, l2), jnp.float32)],
        compiler_params=cparams,
    )(y1, band2, sc1, sh1)

    scale2, shift2 = _bn_affine(st2, g2, b2, valid_rows, 0, w2_out, cout)
    sc2, sh2 = _fold_scale_shift(scale2, shift2, w2_out, 0, w2_out)

    # ---- pass 3: bn2 + relu + avg_pool(1,5) -------------------------------------------
    out = pl.pallas_call(
        _bn2_pool_kernel,
        grid=(n_t,),
        in_specs=[pl.BlockSpec((tile_m, l2), lambda i: (i, 0)),
                  pl.BlockSpec((1, l2), lambda i: (0, 0)),
                  pl.BlockSpec((1, l2), lambda i: (0, 0)),
                  pl.BlockSpec((l2, l_out), lambda i: (0, 0))],
        out_specs=pl.BlockSpec((tile_m, l_out), lambda i: (i, 0)),
        out_shape=jax.ShapeDtypeStruct((m_pad, l_out), jnp.float32),
        compiler_params=cparams,
    )(y2, sc2, sh2, pool)

    # rows (M, P*Cout) -> NCHW (N, Cout, H, P)
    return jnp.transpose(out[:m].reshape(n, h, p_out, cout), (0, 3, 1, 2))


# ---------------------------------------------------------------------------
# Deterministic parameter init (matches module __init__: xavier conv, BN gamma=1 / beta=0)
# ---------------------------------------------------------------------------
def init_params(key, in_channels, out_channels):
    k1, k2 = jax.random.split(key)

    def xavier(k, co, ci):
        a = float(np.sqrt(6.0 / (ci * 1 * 5 + co * 1 * 5)))
        return jax.random.uniform(k, (co, ci, 1, 5), jnp.float32, minval=-a, maxval=a)

    w1 = xavier(k1, out_channels, in_channels)
    w2 = xavier(k2, out_channels, out_channels)
    g1 = jnp.ones((out_channels,), jnp.float32)
    b1 = jnp.zeros((out_channels,), jnp.float32)
    g2 = jnp.ones((out_channels,), jnp.float32)
    b2 = jnp.zeros((out_channels,), jnp.float32)
    return w1, w2, g1, b1, g2, b2


# ---------------------------------------------------------------------------
# Pure-JAX reference (correctness check only)
# ---------------------------------------------------------------------------
def reference(x, w1, w2):
    def conv(x, w):
        return jax.lax.conv_general_dilated(
            x, w, window_strides=(1, 1), padding=((0, 0), (3, 3)),
            dimension_numbers=('NCHW', 'OIHW', 'NCHW'),
            precision=jax.lax.Precision.HIGHEST)

    def bn(x):
        mean = jnp.mean(x, axis=(0, 2, 3), keepdims=True)
        var = jnp.mean((x - mean) ** 2, axis=(0, 2, 3), keepdims=True)
        return (x - mean) * jax.lax.rsqrt(var + BN_EPS)

    y = jnp.maximum(bn(conv(x, w1)), 0.0)
    y = jnp.maximum(bn(conv(y, w2)), 0.0)
    n, c, h, w = y.shape
    p = w // 5
    return y[:, :, :, :p * 5].reshape(n, c, h, p, 5).mean(-1)


if __name__ == "__main__":
    key = jax.random.PRNGKey(0)
    kx, kp = jax.random.split(key)

    N, Cin, Cout, H, W = 2, 4, 8, 16, 16
    x = jax.random.normal(kx, (N, Cin, H, W), jnp.float32)
    w1, w2, g1, b1, g2, b2 = init_params(kp, Cin, Cout)

    ref = jax.block_until_ready(reference(x, w1, w2))

    # default production path: auto tile_m, bf16 intermediates
    out = jax.block_until_ready(conv_block_forward(x, w1, w2, g1, b1, g2, b2))
    assert out.shape == (N, Cout, H, (W + 4) // 5), out.shape
    np.testing.assert_allclose(np.asarray(out), np.asarray(ref), atol=5e-2, rtol=5e-2)

    # f32 intermediates, 4 parallel row tiles (tight tolerance)
    out32 = jax.block_until_ready(conv_block_forward(
        x, w1, w2, g1, b1, g2, b2, tile_m=8, intermediate_dtype=jnp.float32))
    np.testing.assert_allclose(np.asarray(out32), np.asarray(ref), atol=2e-3, rtol=2e-3)

    # f32 intermediates, tile_m that forces row padding + in-kernel row masking
    outp = jax.block_until_ready(conv_block_forward(
        x, w1, w2, g1, b1, g2, b2, tile_m=24, intermediate_dtype=jnp.float32))
    np.testing.assert_allclose(np.asarray(outp), np.asarray(ref), atol=2e-3, rtol=2e-3)

    print("KERNEL_OK")
</pallas_src>

<mosaic_0001>
module attributes {stable_mosaic.version = 11 : i64} {
  func.func @_conv1_kernel(%arg0: i32, %arg1: memref<16x88xf32, #tpu.memory_space<vmem>>, %arg2: memref<88x192xf32, #tpu.memory_space<vmem>>, %arg3: memref<16x192xbf16, #tpu.memory_space<vmem>>, %arg4: memref<1x2x192xf32, #tpu.memory_space<vmem>>) attributes {dimension_semantics = [#tpu.dimension_semantics<parallel>], iteration_bounds = array<i64: 2>, scalar_prefetch = 0 : i64, scratch_operands = 0 : i64, tpu.core_type = #tpu.core_type<tc>, window_params = [{transform_indices = @transform_0, window_bounds = array<i64: 16, 88>}, {pipeline_mode = #tpu.pipeline_mode<synchronous>, transform_indices = @transform_1, window_bounds = array<i64: 88, 192>}, {transform_indices = @transform_2, window_bounds = array<i64: 16, 192>}, {transform_indices = @transform_3, window_bounds = array<i64: 1, 2, 192>}]} {
    %c0 = arith.constant 0 : index
    %c0_0 = arith.constant 0 : index
    %0 = vector.load %arg1[%c0, %c0_0] : memref<16x88xf32, #tpu.memory_space<vmem>>, vector<16x88xf32>
    %c0_1 = arith.constant 0 : index
    %c0_2 = arith.constant 0 : index
    %1 = vector.load %arg2[%c0_1, %c0_2] : memref<88x192xf32, #tpu.memory_space<vmem>>, vector<88x192xf32>
    %cst = arith.constant dense<0.000000e+00> : vector<16x192xf32>
    %2 = tpu.matmul %0, %1, %cst {dimension_numbers = #tpu.dot_dimension_numbers<[1], [0], [0], [1], [0, 0, 1, 1], [], []>} : vector<16x88xf32>, vector<88x192xf32>, vector<16x192xf32> -> vector<16x192xf32>
    %3 = arith.truncf %2 : vector<16x192xf32> to vector<16x192xbf16>
    %c0_3 = arith.constant 0 : index
    %c0_4 = arith.constant 0 : index
    %4 = vector.load %arg3[%c0_3, %c0_4] : memref<16x192xbf16, #tpu.memory_space<vmem>>, vector<16x192xbf16>
    tpu.vector_store %arg3[%c0_3, %c0_4], %3 {strides = array<i32>} : memref<16x192xbf16, #tpu.memory_space<vmem>>, vector<16x192xbf16>,
    %cst_5 = arith.constant dense<0.000000e+00> : vector<192xf32>
    %5 = vector.multi_reduction <add>, %2, %cst_5 [0] : vector<16x192xf32> to vector<192xf32>
    %6 = vector.shape_cast %5 : vector<192xf32> to vector<1x192xf32>
    %7 = arith.mulf %2, %2 : vector<16x192xf32>
    %cst_6 = arith.constant dense<0.000000e+00> : vector<192xf32>
    %8 = vector.multi_reduction <add>, %7, %cst_6 [0] : vector<16x192xf32> to vector<192xf32>
    %9 = vector.shape_cast %8 : vector<192xf32> to vector<1x192xf32>
    %10 = tpu.concatenate %6, %9 in 0 : vector<1x192xf32>, vector<1x192xf32> -> vector<2x192xf32>
    %11 = vector.shape_cast %10 : vector<2x192xf32> to vector<1x2x192xf32>
    %c0_7 = arith.constant 0 : index
    %c0_8 = arith.constant 0 : index
    %c0_9 = arith.constant 0 : index
    %12 = vector.load %arg4[%c0_7, %c0_8, %c0_9] : memref<1x2x192xf32, #tpu.memory_space<vmem>>, vector<1x2x192xf32>
    tpu.vector_store %arg4[%c0_7, %c0_8, %c0_9], %11 {strides = array<i32>} : memref<1x2x192xf32, #tpu.memory_space<vmem>>, vector<1x2x192xf32>,
    return
  }
  func.func @transform_0(%arg0: i32) -> (i32, i32) {
    %c0_i32 = arith.constant 0 : i32
    %c0_i32_0 = arith.constant 0 : i32
    return %arg0, %c0_i32 : i32, i32
  }
  func.func @transform_1(%arg0: i32) -> (i32, i32) {
    %c0_i32 = arith.constant 0 : i32
    %c0_i32_0 = arith.constant 0 : i32
    %c0_i32_1 = arith.constant 0 : i32
    return %c0_i32, %c0_i32_0 : i32, i32
  }
  func.func @transform_2(%arg0: i32) -> (i32, i32) {
    %c0_i32 = arith.constant 0 : i32
    %c0_i32_0 = arith.constant 0 : i32
    return %arg0, %c0_i32 : i32, i32
  }
  func.func @transform_3(%arg0: i32) -> (i32, i32, i32) {
    %c0_i32 = arith.constant 0 : i32
    %c0_i32_0 = arith.constant 0 : i32
    %c0_i32_1 = arith.constant 0 : i32
    return %arg0, %c0_i32, %c0_i32_0 : i32, i32, i32
  }
}

module attributes {stable_mosaic.version = 11 : i64} {
  func.func @_bn1_conv2_kernel(%arg0: i32, %arg1: memref<16x192xbf16, #tpu.memory_space<vmem>>, %arg2: memref<192x160xf32, #tpu.memory_space<vmem>>, %arg3: memref<1x192xf32, #tpu.memory_space<vmem>>, %arg4: memref<1x192xf32, #tpu.memory_space<vmem>>, %arg5: memref<16x160xbf16, #tpu.memory_space<vmem>>, %arg6: memref<1x2x160xf32, #tpu.memory_space<vmem>>) attributes {dimension_semantics = [#tpu.dimension_semantics<parallel>], iteration_bounds = array<i64: 2>, scalar_prefetch = 0 : i64, scratch_operands = 0 : i64, tpu.core_type = #tpu.core_type<tc>, window_params = [{transform_indices = @transform_0, window_bounds = array<i64: 16, 192>}, {pipeline_mode = #tpu.pipeline_mode<synchronous>, transform_indices = @transform_1, window_bounds = array<i64: 192, 160>}, {pipeline_mode = #tpu.pipeline_mode<synchronous>, transform_indices = @transform_2, window_bounds = array<i64: 1, 192>}, {pipeline_mode = #tpu.pipeline_mode<synchronous>, transform_indices = @transform_3, window_bounds = array<i64: 1, 192>}, {transform_indices = @transform_4, window_bounds = array<i64: 16, 160>}, {transform_indices = @transform_5, window_bounds = array<i64: 1, 2, 160>}]} {
    %c0 = arith.constant 0 : index
    %c0_0 = arith.constant 0 : index
    %0 = vector.load %arg1[%c0, %c0_0] : memref<16x192xbf16, #tpu.memory_space<vmem>>, vector<16x192xbf16>
    %1 = arith.extf %0 : vector<16x192xbf16> to vector<16x192xf32>
    %c0_1 = arith.constant 0 : index
    %c0_2 = arith.constant 0 : index
    %2 = vector.load %arg3[%c0_1, %c0_2] : memref<1x192xf32, #tpu.memory_space<vmem>>, vector<1x192xf32>
    %3 = vector.broadcast %2 : vector<1x192xf32> to vector<16x192xf32>
    %4 = arith.mulf %1, %3 : vector<16x192xf32>
    %c0_3 = arith.constant 0 : index
    %c0_4 = arith.constant 0 : index
    %5 = vector.load %arg4[%c0_3, %c0_4] : memref<1x192xf32, #tpu.memory_space<vmem>>, vector<1x192xf32>
    %6 = vector.broadcast %5 : vector<1x192xf32> to vector<16x192xf32>
    %7 = arith.addf %4, %6 : vector<16x192xf32>
    %cst = arith.constant 0.000000e+00 : f32
    %8 = vector.broadcast %cst : f32 to vector<16x192xf32>
    %9 = arith.maximumf %7, %8 : vector<16x192xf32>
    %c0_5 = arith.constant 0 : index
    %c0_6 = arith.constant 0 : index
    %10 = vector.load %arg2[%c0_5, %c0_6] : memref<192x160xf32, #tpu.memory_space<vmem>>, vector<192x160xf32>
    %cst_7 = arith.constant dense<0.000000e+00> : vector<16x160xf32>
    %11 = tpu.matmul %9, %10, %cst_7 {dimension_numbers = #tpu.dot_dimension_numbers<[1], [0], [0], [1], [0, 0, 1, 1], [], []>} : vector<16x192xf32>, vector<192x160xf32>, vector<16x160xf32> -> vector<16x160xf32>
    %12 = arith.truncf %11 : vector<16x160xf32> to vector<16x160xbf16>
    %c0_8 = arith.constant 0 : index
    %c0_9 = arith.constant 0 : index
    %13 = vector.load %arg5[%c0_8, %c0_9] : memref<16x160xbf16, #tpu.memory_space<vmem>>, vector<16x160xbf16>
    tpu.vector_store %arg5[%c0_8, %c0_9], %12 {strides = array<i32>} : memref<16x160xbf16, #tpu.memory_space<vmem>>, vector<16x160xbf16>,
    %cst_10 = arith.constant dense<0.000000e+00> : vector<160xf32>
    %14 = vector.multi_reduction <add>, %11, %cst_10 [0] : vector<16x160xf32> to vector<160xf32>
    %15 = vector.shape_cast %14 : vector<160xf32> to vector<1x160xf32>
    %16 = arith.mulf %11, %11 : vector<16x160xf32>
    %cst_11 = arith.constant dense<0.000000e+00> : vector<160xf32>
    %17 = vector.multi_reduction <add>, %16, %cst_11 [0] : vector<16x160xf32> to vector<160xf32>
    %18 = vector.shape_cast %17 : vector<160xf32> to vector<1x160xf32>
    %19 = tpu.concatenate %15, %18 in 0 : vector<1x160xf32>, vector<1x160xf32> -> vector<2x160xf32>
    %20 = vector.shape_cast %19 : vector<2x160xf32> to vector<1x2x160xf32>
    %c0_12 = arith.constant 0 : index
    %c0_13 = arith.constant 0 : index
    %c0_14 = arith.constant 0 : index
    %21 = vector.load %arg6[%c0_12, %c0_13, %c0_14] : memref<1x2x160xf32, #tpu.memory_space<vmem>>, vector<1x2x160xf32>
    tpu.vector_store %arg6[%c0_12, %c0_13, %c0_14], %20 {strides = array<i32>} : memref<1x2x160xf32, #tpu.memory_space<vmem>>, vector<1x2x160xf32>,
    return
  }
  func.func @transform_0(%arg0: i32) -> (i32, i32) {
    %c0_i32 = arith.constant 0 : i32
    %c0_i32_0 = arith.constant 0 : i32
    return %arg0, %c0_i32 : i32, i32
  }
  func.func @transform_1(%arg0: i32) -> (i32, i32) {
    %c0_i32 = arith.constant 0 : i32
    %c0_i32_0 = arith.constant 0 : i32
    %c0_i32_1 = arith.constant 0 : i32
    return %c0_i32, %c0_i32_0 : i32, i32
  }
  func.func @transform_2(%arg0: i32) -> (i32, i32) {
    %c0_i32 = arith.constant 0 : i32
    %c0_i32_0 = arith.constant 0 : i32
    %c0_i32_1 = arith.constant 0 : i32
    return %c0_i32, %c0_i32_0 : i32, i32
  }
  func.func @transform_3(%arg0: i32) -> (i32, i32) {
    %c0_i32 = arith.constant 0 : i32
    %c0_i32_0 = arith.constant 0 : i32
    %c0_i32_1 = arith.constant 0 : i32
    return %c0_i32, %c0_i32_0 : i32, i32
  }
  func.func @transform_4(%arg0: i32) -> (i32, i32) {
    %c0_i32 = arith.constant 0 : i32
    %c0_i32_0 = arith.constant 0 : i32
    return %arg0, %c0_i32 : i32, i32
  }
  func.func @transform_5(%arg0: i32) -> (i32, i32, i32) {
    %c0_i32 = arith.constant 0 : i32
    %c0_i32_0 = arith.constant 0 : i32
    %c0_i32_1 = arith.constant 0 : i32
    return %arg0, %c0_i32, %c0_i32_0 : i32, i32, i32
  }
}

module attributes {stable_mosaic.version = 11 : i64} {
  func.func @_bn2_pool_kernel(%arg0: i32, %arg1: memref<16x160xbf16, #tpu.memory_space<vmem>>, %arg2: memref<1x160xf32, #tpu.memory_space<vmem>>, %arg3: memref<1x160xf32, #tpu.memory_space<vmem>>, %arg4: memref<160x32xf32, #tpu.memory_space<vmem>>, %arg5: memref<16x32xf32, #tpu.memory_space<vmem>>) attributes {dimension_semantics = [#tpu.dimension_semantics<parallel>], iteration_bounds = array<i64: 2>, scalar_prefetch = 0 : i64, scratch_operands = 0 : i64, tpu.core_type = #tpu.core_type<tc>, window_params = [{transform_indices = @transform_0, window_bounds = array<i64: 16, 160>}, {pipeline_mode = #tpu.pipeline_mode<synchronous>, transform_indices = @transform_1, window_bounds = array<i64: 1, 160>}, {pipeline_mode = #tpu.pipeline_mode<synchronous>, transform_indices = @transform_2, window_bounds = array<i64: 1, 160>}, {pipeline_mode = #tpu.pipeline_mode<synchronous>, transform_indices = @transform_3, window_bounds = array<i64: 160, 32>}, {transform_indices = @transform_4, window_bounds = array<i64: 16, 32>}]} {
    %c0 = arith.constant 0 : index
    %c0_0 = arith.constant 0 : index
    %0 = vector.load %arg1[%c0, %c0_0] : memref<16x160xbf16, #tpu.memory_space<vmem>>, vector<16x160xbf16>
    %1 = arith.extf %0 : vector<16x160xbf16> to vector<16x160xf32>
    %c0_1 = arith.constant 0 : index
    %c0_2 = arith.constant 0 : index
    %2 = vector.load %arg2[%c0_1, %c0_2] : memref<1x160xf32, #tpu.memory_space<vmem>>, vector<1x160xf32>
    %3 = vector.broadcast %2 : vector<1x160xf32> to vector<16x160xf32>
    %4 = arith.mulf %1, %3 : vector<16x160xf32>
    %c0_3 = arith.constant 0 : index
    %c0_4 = arith.constant 0 : index
    %5 = vector.load %arg3[%c0_3, %c0_4] : memref<1x160xf32, #tpu.memory_space<vmem>>, vector<1x160xf32>
    %6 = vector.broadcast %5 : vector<1x160xf32> to vector<16x160xf32>
    %7 = arith.addf %4, %6 : vector<16x160xf32>
    %cst = arith.constant 0.000000e+00 : f32
    %8 = vector.broadcast %cst : f32 to vector<16x160xf32>
    %9 = arith.maximumf %7, %8 : vector<16x160xf32>
    %c0_5 = arith.constant 0 : index
    %c0_6 = arith.constant 0 : index
    %10 = vector.load %arg4[%c0_5, %c0_6] : memref<160x32xf32, #tpu.memory_space<vmem>>, vector<160x32xf32>
    %cst_7 = arith.constant dense<0.000000e+00> : vector<16x32xf32>
    %11 = tpu.matmul %9, %10, %cst_7 {dimension_numbers = #tpu.dot_dimension_numbers<[1], [0], [0], [1], [0, 0, 1, 1], [], []>} : vector<16x160xf32>, vector<160x32xf32>, vector<16x32xf32> -> vector<16x32xf32>
    %c0_8 = arith.constant 0 : index
    %c0_9 = arith.constant 0 : index
    %12 = vector.load %arg5[%c0_8, %c0_9] : memref<16x32xf32, #tpu.memory_space<vmem>>, vector<16x32xf32>
    tpu.vector_store %arg5[%c0_8, %c0_9], %11 {strides = array<i32>} : memref<16x32xf32, #tpu.memory_space<vmem>>, vector<16x32xf32>,
    return
  }
  func.func @transform_0(%arg0: i32) -> (i32, i32) {
    %c0_i32 = arith.constant 0 : i32
    %c0_i32_0 = arith.constant 0 : i32
    return %arg0, %c0_i32 : i32, i32
  }
  func.func @transform_1(%arg0: i32) -> (i32, i32) {
    %c0_i32 = arith.constant 0 : i32
    %c0_i32_0 = arith.constant 0 : i32
    %c0_i32_1 = arith.constant 0 : i32
    return %c0_i32, %c0_i32_0 : i32, i32
  }
  func.func @transform_2(%arg0: i32) -> (i32, i32) {
    %c0_i32 = arith.constant 0 : i32
    %c0_i32_0 = arith.constant 0 : i32
    %c0_i32_1 = arith.constant 0 : i32
    return %c0_i32, %c0_i32_0 : i32, i32
  }
  func.func @transform_3(%arg0: i32) -> (i32, i32) {
    %c0_i32 = arith.constant 0 : i32
    %c0_i32_0 = arith.constant 0 : i32
    %c0_i32_1 = arith.constant 0 : i32
    return %c0_i32, %c0_i32_0 : i32, i32
  }
  func.func @transform_4(%arg0: i32) -> (i32, i32) {
    %c0_i32 = arith.constant 0 : i32
    %c0_i32_0 = arith.constant 0 : i32
    return %arg0, %c0_i32 : i32, i32
  }
}

</mosaic_0001>

<bundles_post_ra>
// kernel: conv_block_forward.3
= control target key start
LH: loop header
LB: loop body
LE: loop exit
PB: predicated region body
PF: predicated region fallthrough
CT: control target
= control target key end

     0   :  { %s544_s12 = smov 0   ;;  %s646_s0 = inlined_call_operand.vmem [shape: f32[32,88], index: 0, kind: input, shape index: {}]   ;;  %s647_s1 = inlined_call_operand.vmem [shape: f32[88,192], index: 1, kind: input, shape index: {}]   ;;  %s648_s2 = inlined_call_operand.vmem [shape: bf16[32,192], index: 2, kind: output, shape index: {0}]   ;;  %s649_s3 = inlined_call_operand.vmem [shape: f32[2,2,192], index: 3, kind: output, shape index: {1}]  }
   0x1 LB: > { %s550_s13 = sadd.s32 4294967295, %s520_s12   ;;  %p464_p0 = scmp.ge.s32.totalorder %s520_s12, 1  ;;  %s520_s12 = sphi %s544_s12, %s14_s12  }
   0x2   : > { %p141_p1 = scmp.lt.s32.totalorder %s520_s12, 3 }
   0x4   : > { %p142_p2 = pnand %p464_p0, %p141_p1 }
   0x5   : > { %s465_s28 = sshll.u32 (!%p142_p2), %s550_s13, 1  ;;  %p184_p4 = scmp.lt.s32.totalorder (!%p142_p2), %s550_s13, 1 }
   0x6   : > { %145 = sbr.rel (%p142_p2) target bundleno = 254 (0xfe), region = 28  ;;  %p172_p3 = scmp.lt.s32.totalorder (!%p142_p2), %s465_s28, 3 }
   0xb   : > { %v212_v0 = vld [vmem:[%s647_s1 + $0xa8] sm:$0xff]  ;;  %v211_v1 = vld [vmem:[%s647_s1 + $0xa0] sm:$0xff]  ;;  %v210_v2 = vld [vmem:[%s647_s1 + $0x98] sm:$0xff]  ;;  %s651_s28 = smov (!%p172_p3, %s465_s28), 3  ;;  %vm213_vm0 = vcmask 719872   ;;  %v522_v24 = vmov 0.0   ;;  %v360_v58 = vlaneseq }
   0xc   : > { %230 = vmatprep.subr.mxu0 %v212_v0  ;;  %482 = vmatprep.subr.mxu1 %v212_v0  ;;  %v209_v3 = vld [vmem:[%s647_s1 + $0x90] sm:$0xff]  ;;  %v208_v4 = vld [vmem:[%s647_s1 + $0x88] sm:$0xff]  ;;  %v207_v5 = vld [vmem:[%s647_s1 + $0x80] sm:$0xff]  ;;  %s466_s26 = sshll.u32 %s651_s28, 3  ;;  %vm309_vm1 = vcmask 1043456   ;;  %vm310_vm2 = vcmask 523268  }
   0xd   : > { %231 = vmatpush1.msra.mxu0 %v211_v1  ;;  %493 = vmatpush1.msra.mxu1 %v211_v1  ;;  %v206_v6 = vld [vmem:[%s647_s1 + $0x78] sm:$0xff]  ;;  %v205_v7 = vld [vmem:[%s647_s1 + $0x70] sm:$0xff]  ;;  %v204_v8 = vld [vmem:[%s647_s1 + $0x68] sm:$0xff]  ;;  %s175_s9 = scalar_lea.vmem %s646_s0, %s466_s26  ;;  %vm321_vm3 = vcmask 523264   ;;  %s182_s16 = scalar_lea.vmem %s648_s2, %s466_s26  ;;  %v523_v56 = vmov 1983009808  }
   0xe   : > { %232 = vmatprep.subr.mxu0 %v210_v2  ;;  %483 = vmatprep.subr.mxu1 %v210_v2  ;;  %v203_v9 = vld [vmem:[%s647_s1 + $0x60] sm:$0xff]  ;;  %v202_v10 = vld [vmem:[%s647_s1 + $0x58] sm:$0xff]  ;;  %v201_v11 = vld [vmem:[%s647_s1 + $0x50] sm:$0xff]  ;;  %v358_v57 = vunpack.c.l.s4 %v523_v56  ;;  %s653_s13 = smov (!%p184_p4, %s550_s13), 1  ;;  %v361_v2 = vshrl.u32 %v360_v58, 7  ;;  %vm351_vm5 = vcmask 1040384  }
   0xf   : > { %233 = vmatpush1.msra.mxu0 %v209_v3  ;;  %494 = vmatpush1.msra.mxu1 %v209_v3  ;;  %v200_v12 = vld [vmem:[%s647_s1 + $0x48] sm:$0xff]  ;;  %v199_v13 = vld [vmem:[%s647_s1 + $0x40] sm:$0xff]  ;;  %v198_v14 = vld [vmem:[%s647_s1 + $0x38] sm:$0xff]  ;;  %s479_s28 = sshll.u32 %s653_s13, 2  ;;  %vm365_vm6 = vcmask 1041408   ;;  %vm366_vm7 = vcmask 519170  }
  0x10   : > { %234 = vmatprep.subr.mxu0 %v208_v4  ;;  %484 = vmatprep.subr.mxu1 %v208_v4  ;;  %v197_v15 = vld [vmem:[%s647_s1 + $0x30] sm:$0xff]  ;;  %v196_v16 = vld [vmem:[%s647_s1 + $0x28] sm:$0xff]  ;;  %v195_v17 = vld [vmem:[%s647_s1 + $0x20] sm:$0xff]  ;;  %v359_v1 = vunpack.c.0.s8 %v358_v57  ;;  %s188_s19 = scalar_lea.vmem %s649_s3, %s479_s28 }
  0x11   : > { %235 = vmatpush1.msra.mxu0 %v207_v5  ;;  %495 = vmatpush1.msra.mxu1 %v207_v5  ;;  %v194_v18 = vld [vmem:[%s647_s1 + $0x18] sm:$0xff]  ;;  %v193_v19 = vld [vmem:[%s647_s1 + $0x10] sm:$0xff]  ;;  %v192_v20 = vld [vmem:[%s647_s1 + $0x8] sm:$0xff] }
  0x12   : > { %236 = vmatprep.subr.mxu0 %v206_v6  ;;  %485 = vmatprep.subr.mxu1 %v206_v6  ;;  %v191_v21 = vld [vmem:[%s647_s1] sm:$0xff]  ;;  %v190_v23 = vld [vmem:[%s175_s9 + $0x8] sm:$0xff]  ;;  %vm311_vm4 = vmor %vm310_vm2, %vm309_vm1 }
  0x13   : > { %237 = vmatpush1.msra.mxu0 %v205_v7  ;;  %496 = vmatpush1.msra.mxu1 %v205_v7  ;;  %v189_v22 = vld [vmem:[%s175_s9] sm:$0xff]  ;;  %vm367_vm8 = vmor %vm366_vm7, %vm365_vm6 }
  0x14   : > { %238 = vmatprep.subr.mxu0 %v204_v8  ;;  %486 = vmatprep.subr.mxu1 %v204_v8  ;;  %v362_v8 = vsub.s32 %v359_v1, %v361_v2 }
  0x15   : > { %239 = vmatpush1.msra.mxu0 %v203_v9  ;;  %497 = vmatpush1.msra.mxu1 %v203_v9 }
  0x16   : > { %240 = vmatprep.subr.mxu0 %v202_v10  ;;  %487 = vmatprep.subr.mxu1 %v202_v10 }
  0x17   : > { %241 = vmatpush1.msra.mxu0 %v201_v11  ;;  %498 = vmatpush1.msra.mxu1 %v201_v11 }
  0x18   : > { %242 = vmatprep.subr.mxu0 %v200_v12  ;;  %488 = vmatprep.subr.mxu1 %v200_v12 }
  0x19   : > { %243 = vmatpush1.msra.mxu0 %v199_v13  ;;  %499 = vmatpush1.msra.mxu1 %v199_v13 }
  0x1a   : > { %244 = vmatprep.subr.mxu0 %v198_v14  ;;  %489 = vmatprep.subr.mxu1 %v198_v14 }
  0x1b   : > { %245 = vmatpush1.msra.mxu0 %v197_v15  ;;  %500 = vmatpush1.msra.mxu1 %v197_v15 }
  0x1c   : > { %246 = vmatprep.subr.mxu0 %v196_v16  ;;  %490 = vmatprep.subr.mxu1 %v196_v16 }
  0x1d   : > { %247 = vmatpush1.msra.mxu0 %v195_v17  ;;  %501 = vmatpush1.msra.mxu1 %v195_v17 }
  0x1e   : > { %248 = vmatprep.subr.mxu0 %v194_v18  ;;  %491 = vmatprep.subr.mxu1 %v194_v18 }
  0x1f   : > { %249 = vmatpush1.msra.mxu0 %v193_v19  ;;  %502 = vmatpush1.msra.mxu1 %v193_v19 }
  0x20   : > { %250 = vmatprep.subr.mxu0 %v192_v20  ;;  %492 = vmatprep.subr.mxu1 %v192_v20 }
  0x21   : > { %251 = vmatpush1.msra.mxu0 %v191_v21  ;;  %503 = vmatpush1.msra.mxu1 %v191_v21 }
  0x22   : > { %284 = vmatprep.mubr.f32.mxu0 %v522_v24  ;;  %290 = vmatprep.mubr.f32.mxu1 %v522_v24 }
  0x23   : > { %472 = vmatmul.mubr.msk.f32.vlgmr.msra.gmra.mxu0 %vm213_vm0, %v189_v22  ;;  %473 = vmatmul.mubr.msk.f32.vlgmr.msra.gmra.mxu1 %vm213_vm0, %v190_v23 }
  0xe3   : > { %v286_v25 = vpop.f32.mrf.mxu0  ;;  %v292_v26 = vpop.f32.mrf.mxu1 }
  0xe4   : > { %v331_v27 = vmul.f32 %v286_v25, %v286_v25  ;;  %v314_v28 = vadd.f32 %v292_v26, %v286_v25  ;;  %v333_v29 = vmul.f32 %v292_v26, %v292_v26 }
  0xe5   : > { %v288_v30 = vpop.f32.mrf.mxu0  ;;  %v294_v31 = vpop.f32.mrf.mxu1 }
  0xe6   : > { %v315_v32 = vrot.slane %v314_v28, 4  ;;  %v335_v33 = vadd.f32 %v333_v29, %v331_v27  ;;  %v480_v34 = vpack.c.bf16 %v288_v30, %v286_v25  ;;  %v322_v35 = vsel %vm321_vm3, %v288_v30, 0.0 }
  0xe7   : > { %v332_v36 = vmul.f32 %v288_v30, %v288_v30  ;;  %v481_v37 = vpack.c.bf16 %v294_v31, %v292_v26  ;;  %v323_v38 = vsel %vm321_vm3, %v294_v31, 0.0  ;;  %v334_v39 = vmul.f32 %v294_v31, %v294_v31 }
  0xe8   : > { %v316_v40 = vadd.f32 %v315_v32, %v314_v28  ;;  %v336_v41 = vrot.slane %v335_v33, 4  ;;  %312 = vst.msk [vmem:[%s182_s16] sm:$0xff] %vm311_vm4, %v480_v34  ;;  %v324_v42 = vadd.f32 %v323_v38, %v322_v35 }
  0xe9   : > { %v342_v43 = vsel %vm321_vm3, %v332_v36, 0.0  ;;  %313 = vst.msk [vmem:[%s182_s16 + $0x8] sm:$0xff] %vm311_vm4, %v481_v37  ;;  %v343_v44 = vsel %vm321_vm3, %v334_v39, 0.0 }
  0xea   : > { %v317_v45 = vrot.slane %v316_v40, 2  ;;  %v337_v46 = vadd.f32 %v336_v41, %v335_v33  ;;  %v325_v47 = vrot.slane %v324_v42, 4  ;;  %v344_v48 = vadd.f32 %v343_v44, %v342_v43 }
  0xec   : > { %v338_v49 = vrot.slane %v337_v46, 2  ;;  %v326_v50 = vadd.f32 %v325_v47, %v324_v42  ;;  %v345_v51 = vrot.slane %v344_v48, 4  ;;  %v318_v52 = vadd.f32 %v317_v45, %v316_v40 }
  0xee   : > { %v339_v53 = vadd.f32 %v338_v49, %v337_v46  ;;  %v327_v54 = vrot.slane %v326_v50, 2  ;;  %v346_v55 = vadd.f32 %v345_v51, %v344_v48  ;;  %v319_v62 = vrot.slane %v318_v52, 1 }
  0xf0   : > { %v340_v59 = vrot.slane %v339_v53, 1  ;;  %v328_v60 = vadd.f32 %v327_v54, %v326_v50  ;;  %v347_v61 = vrot.slane %v346_v55, 2  ;;  %v320_v5 = vadd.f32 %v319_v62, %v318_v52 }
  0xf2   : > { %v329_v63 = vrot.slane %v328_v60, 1  ;;  %v348_v0 = vadd.f32 %v347_v61, %v346_v55  ;;  %v341_v3 = vadd.f32 %v340_v59, %v339_v53 }
  0xf4   : > { %v349_v4 = vrot.slane %v348_v0, 1  ;;  %v330_v6 = vadd.f32 %v329_v63, %v328_v60  ;;  %v352_v9 = vsel %vm351_vm5, %v320_v5, %v341_v3 }
  0xf6   : > { %v350_v7 = vadd.f32 %v349_v4, %v348_v0 }
  0xf8   : > { %v353_v10 = vsel %vm351_vm5, %v330_v6, %v350_v7 }
  0xf9   : > { %v356_v11 = vcombine.low %v352_v9, %v353_v10 }
  0xfb   : > { %v363_v12 = vrot.slane %v356_v11, %v362_v8 }
  0xfd   : > { %368 = vst.msk [vmem:[%s188_s19] sm:$0xf] %vm367_vm8, %v363_v12 }
  0xfe PF: > { %s14_s12 = sadd.s32 1, %s520_s12  }
  0xff   : > { %p11_p5 = scmp.ge.s32.totalorder %s14_s12, 4  }
 0x101   :  { %13 = sbr.rel (!%p11_p5) target bundleno = 1 (0x1), region = 70 }

// kernel: mul.55
= control target key start
LH: loop header
LB: loop body
LE: loop exit
PB: predicated region body
PF: predicated region fallthrough
CT: control target
= control target key end

     0   :  { %s34_s0 = inlined_call_operand.vmem [shape: f32[8], index: 0, kind: input, shape index: {}]   ;;  %s35_s1 = inlined_call_operand.vmem [shape: f32[20,8], index: 1, kind: output, shape index: {}]  }
   0x1   :  { %v4_v0 = vld [vmem:[%s34_s0] ss:$0 sm:$0xff] }
   0x2   :  { %5 = vst [vmem:[%s35_s1] sm:$0xff] %v4_v0  ;;  %10 = vst [vmem:[%s35_s1 + $0x8] sm:$0xff] %v4_v0 }
   0x3   :  { %11 = vst [vmem:[%s35_s1 + $0x10] sm:$0xff] %v4_v0 }

// kernel: conv_block_forward.4
= control target key start
LH: loop header
LB: loop body
LE: loop exit
PB: predicated region body
PF: predicated region fallthrough
CT: control target
= control target key end

     0   :  { %s703_s18 = smov 0   ;;  %s894_s0 = inlined_call_operand.vmem [shape: bf16[32,192], index: 0, kind: input, shape index: {}]   ;;  %s895_s1 = inlined_call_operand.vmem [shape: f32[192,160], index: 1, kind: input, shape index: {}]   ;;  %s896_s2 = inlined_call_operand.vmem [shape: f32[1,192], index: 2, kind: input, shape index: {}]   ;;  %s897_s3 = inlined_call_operand.vmem [shape: f32[1,192], index: 3, kind: input, shape index: {}]   ;;  %s898_s4 = inlined_call_operand.vmem [shape: bf16[32,160], index: 4, kind: output, shape index: {0}]   ;;  %s899_s5 = inlined_call_operand.vmem [shape: f32[2,2,160], index: 5, kind: output, shape index: {1}]  }
   0x1 LB: > { %s709_s19 = sadd.s32 4294967295, %s670_s18   ;;  %p587_p0 = scmp.ge.s32.totalorder %s670_s18, 1  ;;  %s670_s18 = sphi %s703_s18, %s16_s18  }
   0x2   : > { %p192_p1 = scmp.lt.s32.totalorder %s670_s18, 3 }
   0x4   : > { %p193_p2 = pnand %p587_p0, %p192_p1 }
   0x5   : > { %s588_s29 = sshll.u32 (!%p193_p2), %s709_s19, 1  ;;  %p241_p4 = scmp.lt.s32.totalorder (!%p193_p2), %s709_s19, 1 }
   0x6   : > { %196 = sbr.rel (%p193_p2) target bundleno = 280 (0x118), region = 36  ;;  %p228_p3 = scmp.lt.s32.totalorder (!%p193_p2), %s588_s29, 3 }
   0xb   : > { %v319_v0 = vld [vmem:[%s895_s1 + $0xf8] sm:$0xff]  ;;  %v318_v1 = vld [vmem:[%s895_s1 + $0xf0] sm:$0xff]  ;;  %v317_v2 = vld [vmem:[%s895_s1 + $0xe8] sm:$0xff]  ;;  %s901_s29 = smov (!%p228_p3, %s588_s29), 3  ;;  %v254_v24 = vlaneseq  ;;  %vm336_vm0 = vcmask 523264   ;;  %vm432_vm1 = vcmask 1043456  }
   0xc   : > { %343 = vmatprep.subr.mxu0 %v319_v0  ;;  %607 = vmatprep.subr.mxu1 %v319_v0  ;;  %v316_v3 = vld [vmem:[%s895_s1 + $0xe0] sm:$0xff]  ;;  %v315_v4 = vld [vmem:[%s895_s1 + $0xd8] sm:$0xff]  ;;  %v314_v5 = vld [vmem:[%s895_s1 + $0xd0] sm:$0xff]  ;;  %s602_s30 = sshll.u32 %s901_s29, 3  ;;  %vm433_vm2 = vcmask 261124   ;;  %vm444_vm3 = vcmask 261120  }
   0xd   : > { %344 = vmatpush1.msra.mxu0 %v318_v1  ;;  %631 = vmatpush1.msra.mxu1 %v318_v1  ;;  %v313_v6 = vld [vmem:[%s895_s1 + $0xc8] sm:$0xff]  ;;  %v312_v7 = vld [vmem:[%s895_s1 + $0xc0] sm:$0xff]  ;;  %v311_v8 = vld [vmem:[%s895_s1 + $0xb8] sm:$0xff]  ;;  %v801_v29 = vshrl.u32 %v254_v24, 7  ;;  %s232_s14 = scalar_lea.vmem %s894_s0, %s602_s30  ;;  %s239_s15 = scalar_lea.vmem %s898_s4, %s602_s30  ;;  %vm474_vm5 = vcmask 1040384   ;;  %vm488_vm6 = vcmask 1041408  }
   0xe   : > { %345 = vmatprep.subr.mxu0 %v317_v2  ;;  %608 = vmatprep.subr.mxu1 %v317_v2  ;;  %v310_v9 = vld [vmem:[%s895_s1 + $0xb0] sm:$0xff]  ;;  %v309_v10 = vld [vmem:[%s895_s1 + $0xa8] sm:$0xff]  ;;  %v308_v11 = vld [vmem:[%s895_s1 + $0xa0] sm:$0xff]  ;;  %s903_s19 = smov (!%p241_p4, %s709_s19), 1  ;;  %vm489_vm7 = vcmask 257026  }
   0xf   : > { %346 = vmatpush1.msra.mxu0 %v316_v3  ;;  %632 = vmatpush1.msra.mxu1 %v316_v3  ;;  %v307_v12 = vld [vmem:[%s895_s1 + $0x98] sm:$0xff]  ;;  %v306_v13 = vld [vmem:[%s895_s1 + $0x90] sm:$0xff]  ;;  %v305_v14 = vld [vmem:[%s895_s1 + $0x88] sm:$0xff]  ;;  %v260_v35 = vsub.s32 1, %v801_v29  ;;  %v256_v38 = vsub.s32 0, %v801_v29  ;;  %s604_s29 = sshll.u32 %s903_s19, 2 }
  0x10   : > { %347 = vmatprep.subr.mxu0 %v315_v4  ;;  %609 = vmatprep.subr.mxu1 %v315_v4  ;;  %v304_v15 = vld [vmem:[%s895_s1 + $0x80] sm:$0xff]  ;;  %v303_v16 = vld [vmem:[%s895_s1 + $0x78] sm:$0xff]  ;;  %v302_v17 = vld [vmem:[%s895_s1 + $0x70] sm:$0xff]  ;;  %s245_s17 = scalar_lea.vmem %s899_s5, %s604_s29 }
  0x11   : > { %348 = vmatpush1.msra.mxu0 %v314_v5  ;;  %633 = vmatpush1.msra.mxu1 %v314_v5  ;;  %v301_v18 = vld [vmem:[%s895_s1 + $0x68] sm:$0xff]  ;;  %v300_v19 = vld [vmem:[%s895_s1 + $0x60] sm:$0xff]  ;;  %v299_v20 = vld [vmem:[%s895_s1 + $0x58] sm:$0xff] }
  0x12   : > { %349 = vmatprep.subr.mxu0 %v313_v6  ;;  %610 = vmatprep.subr.mxu1 %v313_v6  ;;  %v298_v21 = vld [vmem:[%s895_s1 + $0x50] sm:$0xff]  ;;  %v297_v22 = vld [vmem:[%s895_s1 + $0x48] sm:$0xff]  ;;  %v296_v23 = vld [vmem:[%s895_s1 + $0x40] sm:$0xff] }
  0x13   : > { %350 = vmatpush1.msra.mxu0 %v312_v7  ;;  %634 = vmatpush1.msra.mxu1 %v312_v7  ;;  %v295_v25 = vld [vmem:[%s895_s1 + $0x38] sm:$0xff]  ;;  %v294_v26 = vld [vmem:[%s895_s1 + $0x30] sm:$0xff]  ;;  %v293_v27 = vld [vmem:[%s895_s1 + $0x28] sm:$0xff] }
  0x14   : > { %351 = vmatprep.subr.mxu0 %v311_v8  ;;  %611 = vmatprep.subr.mxu1 %v311_v8  ;;  %v292_v28 = vld [vmem:[%s895_s1 + $0x20] sm:$0xff]  ;;  %v291_v30 = vld [vmem:[%s895_s1 + $0x18] sm:$0xff]  ;;  %v290_v31 = vld [vmem:[%s895_s1 + $0x10] sm:$0xff] }
  0x15   : > { %352 = vmatpush1.msra.mxu0 %v310_v9  ;;  %635 = vmatpush1.msra.mxu1 %v310_v9  ;;  %v289_v32 = vld [vmem:[%s895_s1 + $0x8] sm:$0xff]  ;;  %v288_v33 = vld [vmem:[%s895_s1] sm:$0xff]  ;;  %v335_v34 = vld [vmem:[%s895_s1 + $0x178] sm:$0xff] }
  0x16   : > { %353 = vmatprep.subr.mxu0 %v309_v10  ;;  %612 = vmatprep.subr.mxu1 %v309_v10  ;;  %v246_v36 = vld [vmem:[%s232_s14] sm:$0xff]  ;;  %v247_v39 = vld [vmem:[%s232_s14 + $0x8] sm:$0xff]  ;;  %v334_v40 = vld [vmem:[%s895_s1 + $0x170] sm:$0xff] }
  0x17   : > { %354 = vmatpush1.msra.mxu0 %v308_v11  ;;  %636 = vmatpush1.msra.mxu1 %v308_v11  ;;  %v252_v37 = vld [vmem:[%s896_s2] sm:$0x3]  ;;  %v333_v41 = vld [vmem:[%s895_s1 + $0x168] sm:$0xff]  ;;  %v249_v43 = vunpack.c.h.bf16 %v246_v36  ;;  %v251_v45 = vunpack.c.h.bf16 %v247_v39  ;;  %v331_v46 = vld [vmem:[%s895_s1 + $0x158] sm:$0xff]  ;;  %v248_v47 = vunpack.c.l.bf16 %v246_v36  ;;  %v250_v50 = vunpack.c.l.bf16 %v247_v39 }
  0x18   : > { %355 = vmatprep.subr.mxu0 %v307_v12  ;;  %613 = vmatprep.subr.mxu1 %v307_v12  ;;  %v332_v42 = vld [vmem:[%s895_s1 + $0x160] sm:$0xff]  ;;  %v261_v44 = vrot.slane %v252_v37, %v260_v35  ;;  %v257_v48 = vrot.slane %v252_v37, %v256_v38  ;;  %v330_v51 = vld [vmem:[%s895_s1 + $0x150] sm:$0xff]  ;;  %v329_v52 = vld [vmem:[%s895_s1 + $0x148] sm:$0xff] }
  0x19   : > { %356 = vmatpush1.msra.mxu0 %v306_v13  ;;  %637 = vmatpush1.msra.mxu1 %v306_v13  ;;  %v268_v49 = vld [vmem:[%s897_s3] sm:$0x3]  ;;  %v327_v57 = vld [vmem:[%s895_s1 + $0x138] sm:$0xff]  ;;  %v326_v61 = vld [vmem:[%s895_s1 + $0x130] sm:$0xff] }
  0x1a   : > { %357 = vmatprep.subr.mxu0 %v305_v14  ;;  %614 = vmatprep.subr.mxu1 %v305_v14  ;;  %v328_v53 = vld [vmem:[%s895_s1 + $0x140] sm:$0xff]  ;;  %v265_v54 = vmul.f32 %v261_v44, %v249_v43  ;;  %v277_v55 = vrot.slane %v268_v49, %v260_v35  ;;  %v267_v56 = vmul.f32 %v261_v44, %v251_v45  ;;  %v325_v62 = vld [vmem:[%s895_s1 + $0x128] sm:$0xff]  ;;  %v323_v2 = vld [vmem:[%s895_s1 + $0x118] sm:$0xff]  ;;  %v672_v44 = vmov 1983009808  }
  0x1b   : > { %358 = vmatpush1.msra.mxu0 %v304_v15  ;;  %638 = vmatpush1.msra.mxu1 %v304_v15  ;;  %v273_v58 = vrot.slane %v268_v49, %v256_v38  ;;  %v264_v59 = vmul.f32 %v257_v48, %v248_v47  ;;  %v266_v60 = vmul.f32 %v257_v48, %v250_v50  ;;  %v324_v63 = vld [vmem:[%s895_s1 + $0x120] sm:$0xff]  ;;  %v322_v5 = vld [vmem:[%s895_s1 + $0x110] sm:$0xff]  ;;  %v321_v6 = vld [vmem:[%s895_s1 + $0x108] sm:$0xff]  ;;  %v481_v45 = vunpack.c.l.s4 %v672_v44 }
  0x1c   : > { %359 = vmatprep.subr.mxu0 %v303_v16  ;;  %615 = vmatprep.subr.mxu1 %v303_v16  ;;  %v281_v0 = vadd.f32 %v277_v55, %v265_v54  ;;  %v283_v1 = vadd.f32 %v277_v55, %v267_v56  ;;  %v320_v7 = vld [vmem:[%s895_s1 + $0x100] sm:$0xff]  ;;  %vm434_vm4 = vmor %vm433_vm2, %vm432_vm1 }
  0x1d   : > { %360 = vmatpush1.msra.mxu0 %v302_v17  ;;  %639 = vmatpush1.msra.mxu1 %v302_v17  ;;  %v280_v3 = vadd.f32 %v273_v58, %v264_v59  ;;  %v282_v4 = vadd.f32 %v273_v58, %v266_v60  ;;  %vm490_vm8 = vmor %vm489_vm7, %vm488_vm6 }
  0x1e   : > { %361 = vmatprep.subr.mxu0 %v301_v18  ;;  %616 = vmatprep.subr.mxu1 %v301_v18  ;;  %v285_v8 = vmax.f32 %v281_v0, 0.0  ;;  %v287_v9 = vmax.f32 %v283_v1, 0.0 }
  0x1f   : > { %362 = vmatpush1.msra.mxu0 %v300_v19  ;;  %640 = vmatpush1.msra.mxu1 %v300_v19  ;;  %v284_v10 = vmax.f32 %v280_v3, 0.0  ;;  %v286_v11 = vmax.f32 %v282_v4, 0.0 }
  0x20   : > { %363 = vmatprep.subr.mxu0 %v299_v20  ;;  %617 = vmatprep.subr.mxu1 %v299_v20 }
  0x21   : > { %364 = vmatpush1.msra.mxu0 %v298_v21  ;;  %641 = vmatpush1.msra.mxu1 %v298_v21 }
  0x22   : > { %365 = vmatprep.subr.mxu0 %v297_v22  ;;  %618 = vmatprep.subr.mxu1 %v297_v22 }
  0x23   : > { %366 = vmatpush1.msra.mxu0 %v296_v23  ;;  %642 = vmatpush1.msra.mxu1 %v296_v23 }
  0x24   : > { %367 = vmatprep.subr.mxu0 %v295_v25  ;;  %619 = vmatprep.subr.mxu1 %v295_v25 }
  0x25   : > { %368 = vmatpush1.msra.mxu0 %v294_v26  ;;  %643 = vmatpush1.msra.mxu1 %v294_v26 }
  0x26   : > { %369 = vmatprep.subr.mxu0 %v293_v27  ;;  %620 = vmatprep.subr.mxu1 %v293_v27 }
  0x27   : > { %370 = vmatpush1.msra.mxu0 %v292_v28  ;;  %644 = vmatpush1.msra.mxu1 %v292_v28 }
  0x28   : > { %371 = vmatprep.subr.mxu0 %v291_v30  ;;  %621 = vmatprep.subr.mxu1 %v291_v30 }
  0x29   : > { %372 = vmatpush1.msra.mxu0 %v290_v31  ;;  %645 = vmatpush1.msra.mxu1 %v290_v31 }
  0x2a   : > { %373 = vmatprep.subr.mxu0 %v289_v32  ;;  %622 = vmatprep.subr.mxu1 %v289_v32 }
  0x2b   : > { %374 = vmatpush1.msra.mxu0 %v288_v33  ;;  %646 = vmatpush1.msra.mxu1 %v288_v33 }
  0x2c   : > { %391 = vmatprep.subr.mxu0 %v335_v34  ;;  %623 = vmatprep.subr.mxu1 %v335_v34 }
  0x2d   : > { %392 = vmatpush2.msra.mxu0 %v334_v40  ;;  %647 = vmatpush2.msra.mxu1 %v334_v40 }
  0x2e   : > { %393 = vmatprep.subr.mxu0 %v333_v41  ;;  %624 = vmatprep.subr.mxu1 %v333_v41 }
  0x2f   : > { %394 = vmatpush2.msra.mxu0 %v332_v42  ;;  %648 = vmatpush2.msra.mxu1 %v332_v42 }
  0x30   : > { %395 = vmatprep.subr.mxu0 %v331_v46  ;;  %625 = vmatprep.subr.mxu1 %v331_v46 }
  0x31   : > { %396 = vmatpush2.msra.mxu0 %v330_v51  ;;  %649 = vmatpush2.msra.mxu1 %v330_v51 }
  0x32   : > { %397 = vmatprep.subr.mxu0 %v329_v52  ;;  %626 = vmatprep.subr.mxu1 %v329_v52  ;;  %v482_v52 = vunpack.c.0.s8 %v481_v45 }
  0x33   : > { %398 = vmatpush2.msra.mxu0 %v328_v53  ;;  %650 = vmatpush2.msra.mxu1 %v328_v53 }
  0x34   : > { %399 = vmatprep.subr.mxu0 %v327_v57  ;;  %627 = vmatprep.subr.mxu1 %v327_v57  ;;  %v485_v58 = vsub.s32 %v482_v52, %v801_v29 }
  0x35   : > { %400 = vmatpush2.msra.mxu0 %v326_v61  ;;  %651 = vmatpush2.msra.mxu1 %v326_v61 }
  0x36   : > { %401 = vmatprep.subr.mxu0 %v325_v62  ;;  %628 = vmatprep.subr.mxu1 %v325_v62 }
  0x37   : > { %402 = vmatpush2.msra.mxu0 %v324_v63  ;;  %652 = vmatpush2.msra.mxu1 %v324_v63 }
  0x38   : > { %403 = vmatprep.subr.mxu0 %v323_v2  ;;  %629 = vmatprep.subr.mxu1 %v323_v2 }
  0x39   : > { %404 = vmatpush2.msra.mxu0 %v322_v5  ;;  %653 = vmatpush2.msra.mxu1 %v322_v5 }
  0x3a   : > { %405 = vmatprep.subr.mxu0 %v321_v6  ;;  %630 = vmatprep.subr.mxu1 %v321_v6 }
  0x3b   : > { %406 = vmatpush2.msra.mxu0 %v320_v7  ;;  %654 = vmatpush2.msra.mxu1 %v320_v7 }
  0x3c   : > { %596 = vmatprep.mubr.msk.f32.mxu0 %vm336_vm0, %v285_v8  ;;  %597 = vmatprep.mubr.msk.f32.mxu1 %vm336_vm0, %v287_v9 }
  0x3d   : > { %408 = vmatmul.mubr.f32.vlgmr.msra.gmra.mxu0 %v284_v10  ;;  %414 = vmatmul.mubr.f32.vlgmr.msra.gmra.mxu1 %v286_v11 }
  0xfd   : > { %v409_v12 = vpop.f32.mrf.mxu0  ;;  %v415_v13 = vpop.f32.mrf.mxu1 }
  0xfe   : > { %v454_v14 = vmul.f32 %v409_v12, %v409_v12  ;;  %v437_v15 = vadd.f32 %v415_v13, %v409_v12  ;;  %v456_v16 = vmul.f32 %v415_v13, %v415_v13 }
  0xff   : > { %v411_v17 = vpop.f32.mrf.mxu0  ;;  %v417_v18 = vpop.f32.mrf.mxu1 }
 0x100   : > { %v438_v19 = vrot.slane %v437_v15, 4  ;;  %v458_v20 = vadd.f32 %v456_v16, %v454_v14  ;;  %v605_v21 = vpack.c.bf16 %v411_v17, %v409_v12  ;;  %v445_v22 = vsel %vm444_vm3, %v411_v17, 0.0 }
 0x101   : > { %v455_v23 = vmul.f32 %v411_v17, %v411_v17  ;;  %v606_v24 = vpack.c.bf16 %v417_v18, %v415_v13  ;;  %v446_v25 = vsel %vm444_vm3, %v417_v18, 0.0  ;;  %v457_v26 = vmul.f32 %v417_v18, %v417_v18 }
 0x102   : > { %v439_v27 = vadd.f32 %v438_v19, %v437_v15  ;;  %v459_v28 = vrot.slane %v458_v20, 4  ;;  %435 = vst.msk [vmem:[%s239_s15] sm:$0xff] %vm434_vm4, %v605_v21  ;;  %v447_v30 = vadd.f32 %v446_v25, %v445_v22 }
 0x103   : > { %v465_v31 = vsel %vm444_vm3, %v455_v23, 0.0  ;;  %436 = vst.msk [vmem:[%s239_s15 + $0x8] sm:$0xff] %vm434_vm4, %v606_v24  ;;  %v466_v32 = vsel %vm444_vm3, %v457_v26, 0.0 }
 0x104   : > { %v440_v33 = vrot.slane %v439_v27, 2  ;;  %v460_v34 = vadd.f32 %v459_v28, %v458_v20  ;;  %v448_v35 = vrot.slane %v447_v30, 4  ;;  %v467_v36 = vadd.f32 %v466_v32, %v465_v31 }
 0x106   : > { %v461_v37 = vrot.slane %v460_v34, 2  ;;  %v449_v38 = vadd.f32 %v448_v35, %v447_v30  ;;  %v468_v39 = vrot.slane %v467_v36, 4  ;;  %v441_v40 = vadd.f32 %v440_v33, %v439_v27 }
 0x108   : > { %v462_v41 = vadd.f32 %v461_v37, %v460_v34  ;;  %v450_v42 = vrot.slane %v449_v38, 2  ;;  %v469_v43 = vadd.f32 %v468_v39, %v467_v36  ;;  %v442_v49 = vrot.slane %v441_v40, 1 }
 0x10a   : > { %v463_v46 = vrot.slane %v462_v41, 1  ;;  %v451_v47 = vadd.f32 %v450_v42, %v449_v38  ;;  %v470_v48 = vrot.slane %v469_v43, 2  ;;  %v443_v55 = vadd.f32 %v442_v49, %v441_v40 }
 0x10c   : > { %v452_v50 = vrot.slane %v451_v47, 1  ;;  %v471_v51 = vadd.f32 %v470_v48, %v469_v43  ;;  %v464_v53 = vadd.f32 %v463_v46, %v462_v41 }
 0x10e   : > { %v472_v54 = vrot.slane %v471_v51, 1  ;;  %v453_v56 = vadd.f32 %v452_v50, %v451_v47  ;;  %v475_v59 = vsel %vm474_vm5, %v443_v55, %v464_v53 }
 0x110   : > { %v473_v57 = vadd.f32 %v472_v54, %v471_v51 }
 0x112   : > { %v476_v60 = vsel %vm474_vm5, %v453_v56, %v473_v57 }
 0x113   : > { %v479_v61 = vcombine.low %v475_v59, %v476_v60 }
 0x115   : > { %v486_v62 = vrot.slane %v479_v61, %v485_v58 }
 0x117   : > { %491 = vst.msk [vmem:[%s245_s17] sm:$0xf] %vm490_vm8, %v486_v62 }
 0x118 PF: > { %s16_s18 = sadd.s32 1, %s670_s18  }
 0x119   : > { %p13_p5 = scmp.ge.s32.totalorder %s16_s18, 4  }
 0x11b   :  { %15 = sbr.rel (!%p13_p5) target bundleno = 1 (0x1), region = 78 }

// kernel: conv_block_forward.5
= control target key start
LH: loop header
LB: loop body
LE: loop exit
PB: predicated region body
PF: predicated region fallthrough
CT: control target
= control target key end

     0   :  { %s504_s15 = smov 0   ;;  %s634_s0 = inlined_call_operand.vmem [shape: bf16[32,160], index: 0, kind: input, shape index: {}]   ;;  %s635_s1 = inlined_call_operand.vmem [shape: f32[1,160], index: 1, kind: input, shape index: {}]   ;;  %s636_s2 = inlined_call_operand.vmem [shape: f32[1,160], index: 2, kind: input, shape index: {}]   ;;  %s637_s3 = inlined_call_operand.vmem [shape: f32[160,32], index: 3, kind: input, shape index: {}]   ;;  %s638_s4 = inlined_call_operand.vmem [shape: f32[32,32], index: 4, kind: output, shape index: {}]  }
   0x1 LB: > { %s406_s16 = sadd.s32 4294967295, %s476_s15   ;;  %p410_p0 = scmp.ge.s32.totalorder %s476_s15, 1  ;;  %s476_s15 = sphi %s504_s15, %s14_s15  }
   0x2   : > { %p164_p1 = scmp.lt.s32.totalorder %s476_s15, 3 }
   0x4   : > { %p165_p2 = pnand %p410_p0, %p164_p1 }
   0x5   : > { %s411_s25 = sshll.u32 (!%p165_p2), %s406_s16, 1 }
   0x6   : > { %168 = sbr.rel (%p165_p2) target bundleno = 248 (0xf8), region = 36  ;;  %p192_p3 = scmp.lt.s32.totalorder (!%p165_p2), %s411_s25, 3 }
   0xb   : > { %v261_v0 = vld [vmem:[%s637_s3 + $0x78] sm:$0xff]  ;;  %v478_v1 = vmov 0.0   ;;  %v260_v2 = vld [vmem:[%s637_s3 + $0x70] sm:$0xff]  ;;  %v259_v3 = vld [vmem:[%s637_s3 + $0x68] sm:$0xff]  ;;  %s640_s25 = smov (!%p192_p3, %s411_s25), 3  ;;  %v212_v9 = vlaneseq  ;;  %vm266_vm0 = vcmask 261120  }
   0xc   : > { %273 = vmatprep.subr.mxu0 %v478_v1  ;;  %421 = vmatprep.subr.mxu1 %v478_v1  ;;  %v258_v4 = vld [vmem:[%s637_s3 + $0x60] sm:$0xff]  ;;  %v257_v5 = vld [vmem:[%s637_s3 + $0x58] sm:$0xff]  ;;  %v256_v6 = vld [vmem:[%s637_s3 + $0x50] sm:$0xff]  ;;  %s420_s10 = sshll.u32 %s640_s25, 3 }
   0xd   : > { %274 = vmatpush1.msra.mxu0 %v261_v0  ;;  %441 = vmatpush1.msra.mxu1 %v261_v0  ;;  %v255_v7 = vld [vmem:[%s637_s3 + $0x48] sm:$0xff]  ;;  %v254_v8 = vld [vmem:[%s637_s3 + $0x40] sm:$0xff]  ;;  %v253_v10 = vld [vmem:[%s637_s3 + $0x38] sm:$0xff]  ;;  %v213_v12 = vshrl.u32 %v212_v9, 7  ;;  %s196_s18 = scalar_lea.vmem %s634_s0, %s420_s10  ;;  %s202_s20 = scalar_lea.vmem %s638_s4, %s420_s10 }
   0xe   : > { %275 = vmatprep.subr.mxu0 %v478_v1  ;;  %422 = vmatprep.subr.mxu1 %v478_v1  ;;  %v252_v11 = vld [vmem:[%s637_s3 + $0x30] sm:$0xff]  ;;  %v251_v13 = vld [vmem:[%s637_s3 + $0x28] sm:$0xff]  ;;  %v250_v14 = vld [vmem:[%s637_s3 + $0x20] sm:$0xff] }
   0xf   : > { %276 = vmatpush1.msra.mxu0 %v260_v2  ;;  %442 = vmatpush1.msra.mxu1 %v260_v2  ;;  %v218_v15 = vsub.s32 1, %v213_v12  ;;  %v204_v16 = vld [vmem:[%s196_s18] sm:$0xff]  ;;  %v214_v18 = vsub.s32 0, %v213_v12  ;;  %v205_v19 = vld [vmem:[%s196_s18 + $0x8] sm:$0xff]  ;;  %v249_v20 = vld [vmem:[%s637_s3 + $0x18] sm:$0xff] }
  0x10   : > { %277 = vmatprep.subr.mxu0 %v478_v1  ;;  %423 = vmatprep.subr.mxu1 %v478_v1  ;;  %v210_v17 = vld [vmem:[%s635_s1] sm:$0x3]  ;;  %v248_v21 = vld [vmem:[%s637_s3 + $0x10] sm:$0xff]  ;;  %v207_v22 = vunpack.c.h.bf16 %v204_v16  ;;  %v209_v24 = vunpack.c.h.bf16 %v205_v19  ;;  %v206_v25 = vunpack.c.l.bf16 %v204_v16  ;;  %v208_v28 = vunpack.c.l.bf16 %v205_v19  ;;  %v247_v29 = vld [vmem:[%s637_s3 + $0x8] sm:$0xff] }
  0x11   : > { %278 = vmatpush1.msra.mxu0 %v259_v3  ;;  %443 = vmatpush1.msra.mxu1 %v259_v3  ;;  %v219_v23 = vrot.slane %v210_v17, %v218_v15  ;;  %v215_v26 = vrot.slane %v210_v17, %v214_v18  ;;  %v226_v27 = vld [vmem:[%s636_s2] sm:$0x3]  ;;  %v265_v37 = vld [vmem:[%s637_s3 + $0x98] sm:$0xff]  ;;  %v264_v38 = vld [vmem:[%s637_s3 + $0x90] sm:$0xff] }
  0x12   : > { %279 = vmatprep.subr.mxu0 %v478_v1  ;;  %424 = vmatprep.subr.mxu1 %v478_v1  ;;  %v246_v30 = vld [vmem:[%s637_s3] sm:$0xff]  ;;  %v235_v32 = vrot.slane %v226_v27, %v218_v15  ;;  %v231_v34 = vrot.slane %v226_v27, %v214_v18  ;;  %v263_v43 = vld [vmem:[%s637_s3 + $0x88] sm:$0xff] }
  0x13   : > { %280 = vmatpush1.msra.mxu0 %v258_v4  ;;  %444 = vmatpush1.msra.mxu1 %v258_v4  ;;  %v223_v31 = vmul.f32 %v219_v23, %v207_v22  ;;  %v225_v33 = vmul.f32 %v219_v23, %v209_v24  ;;  %v222_v35 = vmul.f32 %v215_v26, %v206_v25  ;;  %v262_v44 = vld [vmem:[%s637_s3 + $0x80] sm:$0xff] }
  0x14   : > { %281 = vmatprep.subr.mxu0 %v478_v1  ;;  %425 = vmatprep.subr.mxu1 %v478_v1  ;;  %v224_v36 = vmul.f32 %v215_v26, %v208_v28 }
  0x15   : > { %282 = vmatpush1.msra.mxu0 %v257_v5  ;;  %445 = vmatpush1.msra.mxu1 %v257_v5  ;;  %v239_v39 = vadd.f32 %v235_v32, %v223_v31  ;;  %v241_v40 = vadd.f32 %v235_v32, %v225_v33  ;;  %v238_v41 = vadd.f32 %v231_v34, %v222_v35 }
  0x16   : > { %283 = vmatprep.subr.mxu0 %v478_v1  ;;  %426 = vmatprep.subr.mxu1 %v478_v1  ;;  %v240_v42 = vadd.f32 %v231_v34, %v224_v36 }
  0x17   : > { %284 = vmatpush1.msra.mxu0 %v256_v6  ;;  %446 = vmatpush1.msra.mxu1 %v256_v6  ;;  %v243_v45 = vmax.f32 %v239_v39, 0.0  ;;  %v245_v46 = vmax.f32 %v241_v40, 0.0  ;;  %v242_v47 = vmax.f32 %v238_v41, 0.0 }
  0x18   : > { %285 = vmatprep.subr.mxu0 %v478_v1  ;;  %427 = vmatprep.subr.mxu1 %v478_v1  ;;  %v244_v48 = vmax.f32 %v240_v42, 0.0 }
  0x19   : > { %286 = vmatpush1.msra.mxu0 %v255_v7  ;;  %447 = vmatpush1.msra.mxu1 %v255_v7 }
  0x1a   : > { %287 = vmatprep.subr.mxu0 %v478_v1  ;;  %428 = vmatprep.subr.mxu1 %v478_v1 }
  0x1b   : > { %288 = vmatpush1.msra.mxu0 %v254_v8  ;;  %448 = vmatpush1.msra.mxu1 %v254_v8 }
  0x1c   : > { %289 = vmatprep.subr.mxu0 %v478_v1  ;;  %429 = vmatprep.subr.mxu1 %v478_v1 }
  0x1d   : > { %290 = vmatpush1.msra.mxu0 %v253_v10  ;;  %449 = vmatpush1.msra.mxu1 %v253_v10 }
  0x1e   : > { %291 = vmatprep.subr.mxu0 %v478_v1  ;;  %430 = vmatprep.subr.mxu1 %v478_v1 }
  0x1f   : > { %292 = vmatpush1.msra.mxu0 %v252_v11  ;;  %450 = vmatpush1.msra.mxu1 %v252_v11 }
  0x20   : > { %293 = vmatprep.subr.mxu0 %v478_v1  ;;  %431 = vmatprep.subr.mxu1 %v478_v1 }
  0x21   : > { %294 = vmatpush1.msra.mxu0 %v251_v13  ;;  %451 = vmatpush1.msra.mxu1 %v251_v13 }
  0x22   : > { %295 = vmatprep.subr.mxu0 %v478_v1  ;;  %432 = vmatprep.subr.mxu1 %v478_v1 }
  0x23   : > { %296 = vmatpush1.msra.mxu0 %v250_v14  ;;  %452 = vmatpush1.msra.mxu1 %v250_v14 }
  0x24   : > { %297 = vmatprep.subr.mxu0 %v478_v1  ;;  %433 = vmatprep.subr.mxu1 %v478_v1 }
  0x25   : > { %298 = vmatpush1.msra.mxu0 %v249_v20  ;;  %453 = vmatpush1.msra.mxu1 %v249_v20 }
  0x26   : > { %299 = vmatprep.subr.mxu0 %v478_v1  ;;  %434 = vmatprep.subr.mxu1 %v478_v1 }
  0x27   : > { %300 = vmatpush1.msra.mxu0 %v248_v21  ;;  %454 = vmatpush1.msra.mxu1 %v248_v21 }
  0x28   : > { %301 = vmatprep.subr.mxu0 %v478_v1  ;;  %435 = vmatprep.subr.mxu1 %v478_v1 }
  0x29   : > { %302 = vmatpush1.msra.mxu0 %v247_v29  ;;  %455 = vmatpush1.msra.mxu1 %v247_v29 }
  0x2a   : > { %303 = vmatprep.subr.mxu0 %v478_v1  ;;  %436 = vmatprep.subr.mxu1 %v478_v1 }
  0x2b   : > { %304 = vmatpush1.msra.mxu0 %v246_v30  ;;  %456 = vmatpush1.msra.mxu1 %v246_v30 }
  0x2c   : > { %329 = vmatprep.subr.mxu0 %v478_v1  ;;  %437 = vmatprep.subr.mxu1 %v478_v1 }
  0x2d   : > { %330 = vmatpush2.msra.mxu0 %v265_v37  ;;  %457 = vmatpush2.msra.mxu1 %v265_v37 }
  0x2e   : > { %331 = vmatprep.subr.mxu0 %v478_v1  ;;  %438 = vmatprep.subr.mxu1 %v478_v1 }
  0x2f   : > { %332 = vmatpush2.msra.mxu0 %v264_v38  ;;  %458 = vmatpush2.msra.mxu1 %v264_v38 }
  0x30   : > { %333 = vmatprep.subr.mxu0 %v478_v1  ;;  %439 = vmatprep.subr.mxu1 %v478_v1 }
  0x31   : > { %334 = vmatpush2.msra.mxu0 %v263_v43  ;;  %459 = vmatpush2.msra.mxu1 %v263_v43 }
  0x32   : > { %335 = vmatprep.subr.mxu0 %v478_v1  ;;  %440 = vmatprep.subr.mxu1 %v478_v1 }
  0x33   : > { %336 = vmatpush2.msra.mxu0 %v262_v44  ;;  %460 = vmatpush2.msra.mxu1 %v262_v44 }
  0x34   : > { %416 = vmatprep.mubr.msk.f32.mxu0 %vm266_vm0, %v243_v45  ;;  %417 = vmatprep.mubr.msk.f32.mxu1 %vm266_vm0, %v245_v46 }
  0x35   : > { %338 = vmatmul.mubr.f32.vlgmr.msra.gmra.mxu0 %v242_v47  ;;  %343 = vmatmul.mubr.f32.vlgmr.msra.gmra.mxu1 %v244_v48 }
  0xf5   : > { %v339_v49 = vpop.f32.mrf.mxu0  ;;  %v344_v50 = vpop.f32.mrf.mxu1 }
  0xf6   : > { %348 = vst.msk [vmem:[%s202_s20] sm:$0xff] %vm266_vm0, %v339_v49  ;;  %349 = vst.msk [vmem:[%s202_s20 + $0x8] sm:$0xff] %vm266_vm0, %v344_v50 }
  0xf7   : > { %v341_v51 = vpop.f32.mrf.mxu0  ;;  %v346_v52 = vpop.f32.mrf.mxu1 }
  0xf8 PF: > { %s14_s15 = sadd.s32 1, %s476_s15  }
  0xf9   : > { %p11_p4 = scmp.ge.s32.totalorder %s14_s15, 4  }
  0xfb   :  { %13 = sbr.rel (!%p11_p4) target bundleno = 1 (0x1), region = 66 }

</bundles_post_ra>
